<compile_context>
chip_gen: v6e
topology: v6e:2x2x1
jax: 0.10.0
libtpu: 0.0.40
codegen_flags: <defaults>
</compile_context>

<pallas_src>
import functools

import jax
import jax.numpy as jnp
from jax.experimental import pallas as pl
from jax.experimental.pallas import tpu as pltpu

_LANE = 128
_SUBLANE = 8


def _pad_to(v, m):
    return ((v + m - 1) // m) * m


def _block_bytes(rows, cols, itemsize):
    """VMEM footprint of a (rows, cols) block including (8, 128) tile padding."""
    return _pad_to(max(rows, 1), _SUBLANE) * _pad_to(max(cols, 1), _LANE) * itemsize


def _maxpool1d_kernel(x_ref, sel_ref, o_ref, *, k, out_chunk, n_chunks,
                      l_valid, l_stride, need_mask, precision):
    # x_ref:   (row_block, in_l_block)          lane-dense input tile
    # sel_ref: (w_sel, out_chunk)               0/1 selection matrix (VMEM resident)
    # o_ref:   (row_block, n_chunks*out_chunk)  lane-dense output tile
    chunk_in = out_chunk * k
    w_sel = sel_ref.shape[0]                    # == (out_chunk - 1) * k + 1
    sel = sel_ref[...]

    if need_mask:
        j = pl.program_id(1)
        is_last = j == pl.num_programs(1) - 1
        tile_valid = l_valid - j * l_stride     # lanes of this tile holding real data

    for c in range(n_chunks):                   # static unroll over output chunks
        base = c * chunk_in

        # Window max on the VPU: k-1 maxima over k statically shifted views.
        # After this, lane i of `acc` holds max(x[base+i : base+i+k]).
        acc = x_ref[:, pl.ds(base, w_sel)]
        for s in range(1, k):
            acc = jnp.maximum(acc, x_ref[:, pl.ds(base + s, w_sel)])

        # Compact every k-th lane with a 0/1 selection matmul on the idle MXU.
        out = jnp.dot(acc, sel, precision=precision,
                      preferred_element_type=jnp.float32)
        o_ref[:, pl.ds(c * out_chunk, out_chunk)] = out.astype(o_ref.dtype)

        if need_mask:
            # Only the final, overhanging L tile can contain unspecified (stale)
            # VMEM lanes.  Redo this chunk with those lanes zeroed so that
            # 0 * (stale NaN/Inf) cannot poison valid output columns through the
            # selection matmul.  All other grid steps skip this block entirely.
            @pl.when(is_last)
            def _redo_masked(acc=acc, base=base, c=c):
                limit = tile_valid - (base + k - 1)
                lane = jax.lax.broadcasted_iota(jnp.int32, acc.shape, 1)
                acc_m = jnp.where(lane < limit, acc, jnp.zeros_like(acc))
                out_m = jnp.dot(acc_m, sel, precision=precision,
                                preferred_element_type=jnp.float32)
                o_ref[:, pl.ds(c * out_chunk, out_chunk)] = out_m.astype(o_ref.dtype)


def graph_max_pool(x, kernel_size):
    """Equivalent of Graph_MaxPool(kernel_size).forward(x) for x of shape (N, C, L)."""
    n, c, length = x.shape
    k = int(kernel_size)
    l_out = length // k                         # nn.MaxPool1d default: floor, tail dropped
    if l_out == 0:
        raise ValueError("Input length must be >= kernel_size.")
    if k == 1:                                  # MaxPool1d(1, stride=1) is the identity
        return x

    orig_dtype = x.dtype
    if orig_dtype not in (jnp.dtype(jnp.float32), jnp.dtype(jnp.bfloat16)):
        # TODO(synk): native paths for other dtypes; compute in f32 for now.
        x = x.astype(jnp.float32)

    r = n * c
    l_valid = l_out * k
    x2 = x.reshape(r, length)                   # free view; no host-side tail slice
    itemsize = x2.dtype.itemsize

    # ---- generation-aware VMEM budget ---------------------------------------
    try:
        vmem_cap = int(pltpu.get_tpu_info().vmem_capacity_bytes)
    except Exception:
        vmem_cap = 64 * 1024 * 1024             # v7x per-core physical VMEM (smallest)
    vmem_limit = min(vmem_cap * 3 // 4, 64 * 1024 * 1024)
    tile_budget = min(vmem_limit // 2, 28 * 1024 * 1024)  # headroom for Mosaic temps
    target_in = 4 * 1024 * 1024                 # ~4 MiB of (padded) input per grid step

    # ---- tile selection ------------------------------------------------------
    out_chunk = min(_LANE, l_out)               # output lanes per MXU compaction
    chunk_in = out_chunk * k                    # input lanes consumed per chunk
    w_sel = (out_chunk - 1) * k + 1             # contraction width of the selection matmul
    max_chunks = pl.cdiv(l_out, out_chunk)
    row_min = _SUBLANE if itemsize >= 4 else 2 * _SUBLANE

    row_block = r if r <= 512 else 512          # good MXU M-dim to start from

    if out_chunk < _LANE:
        # Small-L path: one L tile covering all pooled windows.
        chunk_cap = 1
        n_chunks = 1
        in_l_block = l_valid if (l_valid == length or l_valid % _LANE == 0) else length
    else:
        # Large-L path: tiles are whole 128-column output chunks (lane-dense stores).
        chunk_cap = min(max_chunks, max(1, length // chunk_in))
        per_chunk = _block_bytes(row_block, chunk_in, itemsize)
        n_chunks = max(1, min(chunk_cap, target_in // max(1, per_chunk)))
        in_l_block = n_chunks * chunk_in

    # If L is already covered by one tile, spend the DMA budget on rows instead.
    if n_chunks == chunk_cap and row_block < r:
        per_row = _pad_to(in_l_block, _LANE) * itemsize
        want_rows = max(row_block, target_in // max(1, per_row))
        row_block = r if want_rows >= r else max(row_min, (want_rows // row_min) * row_min)

    def _vmem_use(rb, nc):
        width_in = nc * chunk_in if out_chunk == _LANE else in_l_block
        in_b = _block_bytes(rb, width_in, itemsize)
        out_b = _block_bytes(rb, nc * out_chunk, itemsize)
        sel_b = _block_bytes(w_sel, out_chunk, itemsize)
        tmp_b = 4 * _block_bytes(rb, chunk_in, 4)   # per-chunk f32 working set (approx)
        return 2 * (in_b + out_b + sel_b) + tmp_b   # 2x: double-buffered pipeline

    while n_chunks > 1 and _vmem_use(row_block, n_chunks) > tile_budget:
        n_chunks -= 1
    while row_block > row_min and _vmem_use(row_block, n_chunks) > tile_budget:
        new_rb = max(row_min, ((row_block // 2) // row_min) * row_min)
        if new_rb == row_block:
            break
        row_block = new_rb

    if out_chunk == _LANE:
        in_l_block = n_chunks * chunk_in
    out_tile = n_chunks * out_chunk

    grid = (pl.cdiv(r, row_block), pl.cdiv(l_out, out_tile))
    need_mask = grid[1] * in_l_block > length   # last L tile overhangs -> stale lanes
    precision = (jax.lax.Precision.HIGHEST
                 if x2.dtype == jnp.dtype(jnp.float32)
                 else jax.lax.Precision.DEFAULT)

    # Selection matrix: sel[i, j] = (i == j*k).  Built once on the host, DMA'd once.
    sel = (jnp.arange(w_sel, dtype=jnp.int32)[:, None]
           == (jnp.arange(out_chunk, dtype=jnp.int32) * k)[None, :]).astype(x2.dtype)

    kernel = functools.partial(
        _maxpool1d_kernel, k=k, out_chunk=out_chunk, n_chunks=n_chunks,
        l_valid=l_valid, l_stride=in_l_block, need_mask=bool(need_mask),
        precision=precision)

    cost = pl.CostEstimate(
        flops=int(r * l_valid * (k - 1) + 2 * r * l_out * w_sel),
        transcendentals=0,
        bytes_accessed=int((r * l_valid + r * l_out + w_sel * out_chunk) * itemsize),
    )

    out = pl.pallas_call(
        kernel,
        out_shape=jax.ShapeDtypeStruct((r, l_out), x2.dtype),
        grid_spec=pltpu.PrefetchScalarGridSpec(
            num_scalar_prefetch=0,
            grid=grid,
            in_specs=[
                pl.BlockSpec((row_block, in_l_block), lambda i, j: (i, j)),
                pl.BlockSpec((w_sel, out_chunk), lambda i, j: (0, 0)),
            ],
            out_specs=pl.BlockSpec((row_block, out_tile), lambda i, j: (i, j)),
        ),
        compiler_params=pltpu.CompilerParams(
            dimension_semantics=("parallel", "parallel"),
            vmem_limit_bytes=int(vmem_limit),
        ),
        cost_estimate=cost,
    )(x2, sel)

    out = out.reshape(n, c, l_out)
    if out.dtype != orig_dtype:
        out = out.astype(orig_dtype)
    return out


class GraphMaxPool:
    """JAX/Pallas counterpart of the PyTorch Graph_MaxPool module."""

    def __init__(self, kernel_size):
        self.kernel_size = int(kernel_size)     # no learned parameters

    def __call__(self, x):
        return graph_max_pool(x, self.kernel_size)


if __name__ == "__main__":
    key = jax.random.PRNGKey(0)
    k0, k1, k2 = jax.random.split(key, 3)

    def ref_pool(x, k):
        n, c, length = x.shape
        lo = length // k
        return jnp.max(x[..., : lo * k].reshape(n, c, lo, k), axis=-1)

    # Primary small case matching the module: (N, C, L) = (2, 4, 16), k = 4.
    pool = GraphMaxPool(4)
    x = jax.random.normal(k0, (2, 4, 16), dtype=jnp.float32)
    y = jax.block_until_ready(pool(x))
    assert y.shape == (2, 4, 4), y.shape
    assert jnp.allclose(y, ref_pool(x, 4)), "f32 small-path mismatch"

    # bf16 path (native single-pass bf16 selection matmul).
    xb = jax.random.normal(k1, (2, 4, 16), dtype=jnp.bfloat16)
    yb = jax.block_until_ready(GraphMaxPool(4)(xb))
    assert jnp.allclose(yb.astype(jnp.float32),
                        ref_pool(xb, 4).astype(jnp.float32)), "bf16 mismatch"

    # Chunked / ragged path: multi-step L grid + last-tile stale-lane guard.
    xr = jax.random.normal(k2, (2, 8, 600), dtype=jnp.float32)
    yr = jax.block_until_ready(GraphMaxPool(4)(xr))
    assert yr.shape == (2, 8, 150), yr.shape
    assert jnp.allclose(yr, ref_pool(xr, 4)), "f32 chunked/ragged mismatch"

    # Dropped-tail case (L % k != 0): tail lanes are read but never pooled.
    yt = jax.block_until_ready(GraphMaxPool(3)(x))
    assert yt.shape == (2, 4, 5), yt.shape
    assert jnp.allclose(yt, ref_pool(x, 3)), "f32 dropped-tail mismatch"

    print("KERNEL_OK")
</pallas_src>

<mosaic_0001>
module attributes {stable_mosaic.version = 11 : i64} {
  func.func @_maxpool1d_kernel(%arg0: i32, %arg1: i32, %arg2: memref<8x16xf32, #tpu.memory_space<vmem>>, %arg3: memref<13x4xf32, #tpu.memory_space<vmem>>, %arg4: memref<8x4xf32, #tpu.memory_space<vmem>>) attributes {dimension_semantics = [#tpu.dimension_semantics<parallel>, #tpu.dimension_semantics<parallel>], iteration_bounds = array<i64: 1, 1>, scalar_prefetch = 0 : i64, scratch_operands = 0 : i64, tpu.core_type = #tpu.core_type<tc>, window_params = [{transform_indices = @transform_0, window_bounds = array<i64: 8, 16>}, {pipeline_mode = #tpu.pipeline_mode<synchronous>, transform_indices = @transform_1, window_bounds = array<i64: 13, 4>}, {transform_indices = @transform_2, window_bounds = array<i64: 8, 4>}]} {
    %c0 = arith.constant 0 : index
    %c0_0 = arith.constant 0 : index
    %0 = vector.load %arg3[%c0, %c0_0] : memref<13x4xf32, #tpu.memory_space<vmem>>, vector<13x4xf32>
    %c0_1 = arith.constant 0 : index
    %c0_2 = arith.constant 0 : index
    %1 = vector.load %arg2[%c0_1, %c0_2] : memref<8x16xf32, #tpu.memory_space<vmem>>, vector<8x13xf32>
    %c0_3 = arith.constant 0 : index
    %c1 = arith.constant 1 : index
    %2 = vector.load %arg2[%c0_3, %c1] : memref<8x16xf32, #tpu.memory_space<vmem>>, vector<8x13xf32>
    %3 = arith.maximumf %1, %2 : vector<8x13xf32>
    %c0_4 = arith.constant 0 : index
    %c2 = arith.constant 2 : index
    %4 = vector.load %arg2[%c0_4, %c2] : memref<8x16xf32, #tpu.memory_space<vmem>>, vector<8x13xf32>
    %5 = arith.maximumf %3, %4 : vector<8x13xf32>
    %c0_5 = arith.constant 0 : index
    %c3 = arith.constant 3 : index
    %6 = vector.load %arg2[%c0_5, %c3] : memref<8x16xf32, #tpu.memory_space<vmem>>, vector<8x13xf32>
    %7 = arith.maximumf %5, %6 : vector<8x13xf32>
    %cst = arith.constant dense<0.000000e+00> : vector<8x4xf32>
    %8 = tpu.matmul %7, %0, %cst {dimension_numbers = #tpu.dot_dimension_numbers<[1], [0], [0], [1], [0, 0, 1, 1], [], []>, precision = #tpu.contract_precision<fp32>} : vector<8x13xf32>, vector<13x4xf32>, vector<8x4xf32> -> vector<8x4xf32>
    %c0_6 = arith.constant 0 : index
    %c0_7 = arith.constant 0 : index
    %9 = vector.load %arg4[%c0_6, %c0_7] : memref<8x4xf32, #tpu.memory_space<vmem>>, vector<8x4xf32>
    tpu.vector_store %arg4[%c0_6, %c0_7], %8 {strides = array<i32>} : memref<8x4xf32, #tpu.memory_space<vmem>>, vector<8x4xf32>,
    return
  }
  func.func @transform_0(%arg0: i32, %arg1: i32) -> (i32, i32) {
    %c0_i32 = arith.constant 0 : i32
    return %arg0, %arg1 : i32, i32
  }
  func.func @transform_1(%arg0: i32, %arg1: i32) -> (i32, i32) {
    %c0_i32 = arith.constant 0 : i32
    %c0_i32_0 = arith.constant 0 : i32
    %c0_i32_1 = arith.constant 0 : i32
    return %c0_i32, %c0_i32_0 : i32, i32
  }
  func.func @transform_2(%arg0: i32, %arg1: i32) -> (i32, i32) {
    %c0_i32 = arith.constant 0 : i32
    return %arg0, %arg1 : i32, i32
  }
}

</mosaic_0001>

<bundles_post_ra>
// kernel: tpu_custom_call.1
= control target key start
LH: loop header
LB: loop body
LE: loop exit
PB: predicated region body
PF: predicated region fallthrough
CT: control target
= control target key end

     0   :  { %vm31_vm0 = vcmask 1044480   ;;  %v565_v1 = vmov 0.0   ;;  %vm566_vm1 = vmmov 0   ;;  %s567_s15 = smov 127   ;;  %s568_s16 = smov 125   ;;  %vm27_vm2 = vcmask 105472   ;;  %s621_s0 = inlined_call_operand.vmem [shape: f32[8,16], index: 0, kind: input, shape index: {}]   ;;  %s622_s1 = inlined_call_operand.vmem [shape: f32[13,4], index: 1, kind: input, shape index: {}]   ;;  %s623_s2 = inlined_call_operand.vmem [shape: f32[8,4], index: 2, kind: output, shape index: {}]  }
   0x1   :  { %v13_v0 = vld [vmem:[%s621_s0] sm:$0xff]  ;;  %525 = vmatprep.subr.mxu1 %v565_v1  ;;  %v12_v2 = vld [vmem:[%s622_s1 + $0x8] sm:$0x1f]  ;;  %529 = vmatprep.mubr.msk.f32.mxu1 %vm566_vm1, %v565_v1  ;;  %s569_s0 = smov 126   ;;  %vm494_vm3 = vcmask 31744  }
   0x2   :  { %v11_v3 = vld [vmem:[%s622_s1] sm:$0xff]  ;;  %15 = vrot.lane.b32.xlu0 %v13_v0, %s567_s15  ;;  %23 = vrot.lane.b32.xlu1 %v13_v0, %s568_s16  ;;  %v33_v4 = vsel %vm31_vm0, %v12_v2, 0 }
   0x3   :  { %v67_v5 = vand.u32 4294901760, %v11_v3  ;;  %v64_v6 = vand.u32 4294901760, %v33_v4  ;;  %518 = vmatprep.subr.mxu0 %v565_v1  ;;  %522 = vmatprep.mubr.msk.f32.mxu0 %vm566_vm1, %v565_v1 }
   0x5   :  { %v149_v7 = vsub.f32 %v11_v3, %v67_v5  ;;  %v142_v8 = vsub.f32 %v33_v4, %v64_v6  ;;  %519 = vmatpush3.msra.mxu0 %v64_v6 }
   0x6   :  { %19 = vrot.lane.b32.xlu0 %v13_v0, %s569_s0  ;;  %520 = vmatprep.subr.mxu0 %v565_v1 }
   0x7   :  { %v150_v9 = vand.u32 4294901760, %v149_v7  ;;  %v143_v10 = vand.u32 4294901760, %v142_v8  ;;  %521 = vmatpush3.msra.mxu0 %v67_v5 }
   0x8   :  { %532 = vmatprep.subr.mxu0 %v565_v1 }
   0x9   :  { %v151_v11 = vsub.f32 %v149_v7, %v150_v9  ;;  %v144_v12 = vsub.f32 %v142_v8, %v143_v10 }
   0xb   :  { %v145_v13 = vand.u32 4294901760, %v144_v12  ;;  %v152_v14 = vand.u32 4294901760, %v151_v11 }
   0xd   :  { %526 = vmatpush3.msra.mxu1 %v145_v13 }
   0xe   :  { %527 = vmatprep.subr.mxu1 %v565_v1 }
   0xf   :  { %528 = vmatpush3.msra.mxu1 %v152_v14 }
  0x10   :  { %539 = vmatprep.subr.mxu1 %v565_v1 }
  0x74   :  { %v16_v15 = vpop.permute.xlu0 %15  ;;  %v24_v18 = vpop.permute.xlu1 %23 }
  0x75   :  { %v18_v16 = vmax.f32 %v13_v0, %v16_v15 }
  0x78   :  { %v20_v17 = vpop.permute.xlu0 %19 }
  0x79   :  { %v22_v19 = vmax.f32 %v18_v16, %v20_v17 }
  0x7b   :  { %v26_v20 = vmax.f32 %v22_v19, %v24_v18 }
  0x7d   :  { %v29_v21 = vsel %vm27_vm2, %v26_v20, 0 }
  0x7e   :  { %v102_v22 = vand.u32 4294901760, %v29_v21 }
  0x80   :  { %v103_v23 = vsub.f32 %v29_v21, %v102_v22  ;;  %530 = vmatmul.mubr.f32.vlgmr.msra.gmra.mxu1 %v102_v22 }
  0x81   :  { %540 = vmatpush3.msra.mxu1 %v64_v6  ;;  %543 = vmatprep.mubr.msk.f32.mxu1 %vm566_vm1, %v565_v1 }
  0x82   :  { %541 = vmatprep.subr.mxu1 %v565_v1  ;;  %v104_v24 = vand.u32 4294901760, %v103_v23 }
  0x83   :  { %542 = vmatpush3.msra.mxu1 %v67_v5 }
  0x84   :  { %544 = vmatmul.mubr.f32.vlgmr.msra.gmra.mxu1 %v104_v24  ;;  %553 = vmatprep.subr.mxu1 %v565_v1  ;;  %v105_v25 = vsub.f32 %v103_v23, %v104_v24 }
  0x85   :  { %554 = vmatpush3.msra.mxu1 %v64_v6  ;;  %557 = vmatprep.mubr.msk.f32.mxu1 %vm566_vm1, %v565_v1 }
  0x86   :  { %555 = vmatprep.subr.mxu1 %v565_v1  ;;  %v106_v26 = vand.u32 4294901760, %v105_v25 }
  0x87   :  { %556 = vmatpush3.msra.mxu1 %v67_v5 }
  0x88   :  { %523 = vmatmul.mubr.f32.vlgmr.msra.gmra.mxu0 %v106_v26  ;;  %558 = vmatmul.mubr.f32.vlgmr.msra.gmra.mxu1 %v102_v22 }
  0x89   :  { %533 = vmatpush3.msra.mxu0 %v142_v8  ;;  %536 = vmatprep.mubr.msk.f32.mxu0 %vm566_vm1, %v565_v1 }
  0x8a   :  { %534 = vmatprep.subr.mxu0 %v565_v1 }
  0x8b   :  { %535 = vmatpush3.msra.mxu0 %v149_v7 }
  0x8c   :  { %546 = vmatprep.subr.mxu0 %v565_v1  ;;  %537 = vmatmul.mubr.f32.vlgmr.msra.gmra.mxu0 %v103_v23 }
  0x8d   :  { %547 = vmatpush3.msra.mxu0 %v143_v10  ;;  %550 = vmatprep.mubr.msk.f32.mxu0 %vm566_vm1, %v565_v1 }
  0x8e   :  { %548 = vmatprep.subr.mxu0 %v565_v1 }
  0x8f   :  { %549 = vmatpush3.msra.mxu0 %v150_v9 }
  0x90   :  { %551 = vmatmul.mubr.f32.vlgmr.msra.gmra.mxu0 %v102_v22 }
 0x140   :  { %v189_v27 = vpop.f32.mrf.mxu1 }
 0x142   :  { %v531_v28 = vpop.f32.mrf.mxu1 }
 0x144   :  { %v340_v29 = vpop.f32.mrf.mxu1 }
 0x146   :  { %v545_v30 = vpop.f32.mrf.mxu1 }
 0x148   :  { %v108_v31 = vpop.f32.mrf.mxu0  ;;  %v490_v32 = vpop.f32.mrf.mxu1 }
 0x149   :  { %v190_v35 = vadd.f32 %v189_v27, %v108_v31 }
 0x14a   :  { %v524_v33 = vpop.f32.mrf.mxu0  ;;  %v559_v34 = vpop.f32.mrf.mxu1 }
 0x14c   :  { %v265_v36 = vpop.f32.mrf.mxu0 }
 0x14d   :  { %v266_v37 = vadd.f32 %v265_v36, %v190_v35 }
 0x14e   :  { %v538_v38 = vpop.f32.mrf.mxu0 }
 0x14f   :  { %v341_v39 = vadd.f32 %v340_v29, %v266_v37 }
 0x150   :  { %v417_v40 = vpop.f32.mrf.mxu0 }
 0x151   :  { %v418_v41 = vadd.f32 %v417_v40, %v341_v39 }
 0x152   :  { %v552_v42 = vpop.f32.mrf.mxu0 }
 0x153   :  { %v491_v43 = vadd.f32 %v490_v32, %v418_v41 }
 0x155   :  { %495 = vst.msk [vmem:[%s623_s2] sm:$0xff] %vm494_vm3, %v491_v43 }

</bundles_post_ra>
